<compile_context>
chip_gen: v7x
topology: tpu7x:2x2x1
jax: 0.10.0
libtpu: 0.0.40
codegen_flags: <defaults>
</compile_context>

<pallas_src>
import functools

import jax
import jax.numpy as jnp
from jax.experimental import pallas as pl
from jax.experimental.pallas import tpu as pltpu

EMB = 128          # embedding dim
GMF_OUT = 64       # gmf_linear output features
MLP_HID = 128      # mlp hidden width
MLP_OUT = 64       # mlp output features

_GATHER_WINDOW = 128   # rows in flight per table (bounds outstanding DMAs)


def ncf_kernel(uid_ref, iid_ref,            # SMEM scalar prefetch: [B_pad] int32
               utab_ref, itab_ref,          # HBM (ANY): [U,256] / [I,256] f32
               w1_ref, cst_ref,             # VMEM: [256,128] bf16, [8,128] f32
               out_ref,                     # VMEM: [bt,1] f32
               ubuf, ibuf, sem):            # scratch: [bt,256] f32 x2, DMA sems
    f32, bf16 = jnp.float32, jnp.bfloat16
    bt = ubuf.shape[0]
    base = pl.program_id(0) * bt

    # ---- fused embedding gather: one row-DMA per table per example ----------
    def start_row(r):
        u = uid_ref[base + r]
        i = iid_ref[base + r]
        pltpu.make_async_copy(utab_ref.at[pl.ds(u, 1)], ubuf.at[pl.ds(r, 1)],
                              sem.at[0]).start()
        pltpu.make_async_copy(itab_ref.at[pl.ds(i, 1)], ibuf.at[pl.ds(r, 1)],
                              sem.at[1]).start()

    def wait_row(r):
        pltpu.make_async_copy(utab_ref.at[pl.ds(0, 1)], ubuf.at[pl.ds(r, 1)],
                              sem.at[0]).wait()
        pltpu.make_async_copy(itab_ref.at[pl.ds(0, 1)], ibuf.at[pl.ds(r, 1)],
                              sem.at[1]).wait()

    lag = min(bt, _GATHER_WINDOW)

    @pl.loop(0, bt)
    def _(r):
        start_row(r)

        @pl.when(r >= lag)
        def _():
            wait_row(r - lag)

    @pl.loop(bt - lag, bt)
    def _(r):
        wait_row(r)

    # ---- compute (all accumulation in f32) ----------------------------------
    ug = ubuf[:, :EMB]                      # gmf user rows   [bt,128] f32
    um = ubuf[:, EMB:]                      # mlp user rows   [bt,128] f32
    ig = ibuf[:, :EMB]                      # gmf item rows   [bt,128] f32
    im = ibuf[:, EMB:]                      # mlp item rows   [bt,128] f32

    gmf = ug * ig                                                        # VPU

    # MLP layer 1 as two K=128 bf16 matmuls (no wrapper concat needed).
    h = (jnp.dot(um.astype(bf16), w1_ref[:EMB, :], preferred_element_type=f32)
         + jnp.dot(im.astype(bf16), w1_ref[EMB:, :], preferred_element_type=f32)
         + cst_ref[0:1, :])                                              # + b1
    h = jnp.maximum(h, 0.0)                                              # ReLU

    # Folded NCF head: logit = gmf @ v_g + h @ v_m  (scalar c added outside).
    z = gmf * cst_ref[1:2, :] + h * cst_ref[2:3, :]
    out_ref[...] = jnp.sum(z, axis=-1, keepdims=True)                    # [bt,1]


def _round_up(x, m):
    return (x + m - 1) // m * m


def _pick_batch_tile(B):
    # >= 2 tiles so both v7x TensorCores get work; <= 2048 rows so gather
    # scratch + pipeline buffers stay ~6 MiB (well under the 32 MiB default
    # scoped VMEM and v7x's 64 MiB physical).
    return max(8, min(2048, _round_up(pl.cdiv(B, 2), 8)))


def prepare_params(params):
    """One-time prep (outside the per-call path): concat tables per entity,
    cast W1 to bf16, fold the purely linear NCF head into v_g / v_m / c."""
    f32 = jnp.float32
    hp = jax.lax.Precision.HIGHEST

    user_tab = jnp.concatenate(
        [params["gmf_user_emb"], params["mlp_user_emb"]], axis=1).astype(f32)
    item_tab = jnp.concatenate(
        [params["gmf_item_emb"], params["mlp_item_emb"]], axis=1).astype(f32)

    w3 = params["ncf_linear_w"].astype(f32)               # [128, 1]
    w3g, w3m = w3[:GMF_OUT, 0], w3[GMF_OUT:, 0]
    vg = jnp.dot(params["gmf_linear_w"].astype(f32), w3g, precision=hp)  # [128]
    vm = jnp.dot(params["mlp_l2_w"].astype(f32), w3m, precision=hp)      # [128]
    c = (jnp.dot(params["mlp_l2_b"].astype(f32), w3m, precision=hp)
         + params["ncf_linear_b"].astype(f32)[0])

    consts = jnp.zeros((8, EMB), f32)
    consts = consts.at[0].set(params["mlp_l1_b"].astype(f32))
    consts = consts.at[1].set(vg)
    consts = consts.at[2].set(vm)

    return {
        "user_tab": user_tab,                              # [U, 256] f32
        "item_tab": item_tab,                              # [I, 256] f32
        "w1": params["mlp_l1_w"].astype(jnp.bfloat16),     # [256, 128] bf16
        "consts": consts,                                  # [8, 128] f32
        "c": c,                                            # scalar
    }


@functools.partial(jax.jit, static_argnames=("batch_tile",))
def ncf_forward(user_id, item_id, prepped, *, batch_tile=None):
    """NCF forward pass. Returns [B] float32 logits (pre-sigmoid scores)."""
    f32 = jnp.float32
    B = user_id.shape[0]
    bt = batch_tile if batch_tile is not None else _pick_batch_tile(B)
    assert bt % 8 == 0
    n_tiles = pl.cdiv(B, bt)
    B_pad = n_tiles * bt

    # Pad the cheap ids (8 B/row), not the gathered activations (~1 KiB/row).
    uid = user_id.astype(jnp.int32)
    iid = item_id.astype(jnp.int32)
    pad = B_pad - B
    if pad:
        uid = jnp.pad(uid, (0, pad))
        iid = jnp.pad(iid, (0, pad))

    cost = pl.CostEstimate(
        flops=2 * B_pad * 2 * EMB * MLP_HID,
        transcendentals=0,
        bytes_accessed=B_pad * (2 * 2 * EMB * 4 + 2 * 4 + 4),
    )

    out = pl.pallas_call(
        ncf_kernel,
        out_shape=jax.ShapeDtypeStruct((B_pad, 1), f32),
        grid_spec=pltpu.PrefetchScalarGridSpec(
            num_scalar_prefetch=2,                  # uid, iid -> SMEM
            grid=(n_tiles,),
            in_specs=[
                pl.BlockSpec(memory_space=pl.ANY),  # user table, stays in HBM
                pl.BlockSpec(memory_space=pl.ANY),  # item table, stays in HBM
                pl.BlockSpec((2 * EMB, MLP_HID), lambda i, u, it: (0, 0)),  # w1
                pl.BlockSpec((8, EMB), lambda i, u, it: (0, 0)),            # consts
            ],
            out_specs=pl.BlockSpec((bt, 1), lambda i, u, it: (i, 0)),
            scratch_shapes=[
                pltpu.VMEM((bt, 2 * EMB), f32),     # gathered user rows
                pltpu.VMEM((bt, 2 * EMB), f32),     # gathered item rows
                pltpu.SemaphoreType.DMA((2,)),
            ],
        ),
        compiler_params=pltpu.CompilerParams(
            dimension_semantics=("parallel",)),
        cost_estimate=cost,
    )(uid, iid, prepped["user_tab"], prepped["item_tab"],
      prepped["w1"], prepped["consts"])

    return (out[:B, 0] + prepped["c"]).astype(f32)


def init_params(key, user_num, item_num):
    ks = jax.random.split(key, 10)

    def rnd(k, shape, scale=0.05):
        return (scale * jax.random.normal(k, shape)).astype(jnp.float32)

    return {
        "gmf_user_emb": rnd(ks[0], (user_num, EMB)),
        "gmf_item_emb": rnd(ks[1], (item_num, EMB)),
        "gmf_linear_w": rnd(ks[2], (EMB, GMF_OUT)),       # [in, out]
        "mlp_user_emb": rnd(ks[3], (user_num, EMB)),
        "mlp_item_emb": rnd(ks[4], (item_num, EMB)),
        "mlp_l1_w":     rnd(ks[5], (2 * EMB, MLP_HID)),   # [in, out]
        "mlp_l1_b":     rnd(ks[6], (MLP_HID,)),
        "mlp_l2_w":     rnd(ks[7], (MLP_HID, MLP_OUT)),   # [in, out]
        "mlp_l2_b":     rnd(ks[8], (MLP_OUT,)),
        "ncf_linear_w": rnd(ks[9], (GMF_OUT + MLP_OUT, 1)),
        "ncf_linear_b": jnp.zeros((1,), jnp.float32),
    }


def ncf_reference(user_id, item_id, params):
    """Pure-JAX reference with the original (unfused) NCF structure.  The only
    rounding mirrored from the kernel is bf16 storage of the MLP layer-1
    inputs/weights; GMF branch and all accumulation are f32, so this validates
    the fused gather, the split K=128 matmuls and the algebraic head fold."""
    f32 = jnp.float32
    hp = jax.lax.Precision.HIGHEST
    q = lambda x: x.astype(jnp.bfloat16).astype(f32)

    gmf_u = params["gmf_user_emb"][user_id].astype(f32)
    gmf_i = params["gmf_item_emb"][item_id].astype(f32)
    gmf_out = jnp.dot(gmf_u * gmf_i, params["gmf_linear_w"].astype(f32),
                      precision=hp)

    mlp_u = q(params["mlp_user_emb"][user_id])
    mlp_i = q(params["mlp_item_emb"][item_id])
    mlp_in = jnp.concatenate([mlp_u, mlp_i], axis=1)
    h = jnp.dot(mlp_in, q(params["mlp_l1_w"]), precision=hp) + params["mlp_l1_b"]
    h = jnp.maximum(h, 0.0)
    mlp_out = (jnp.dot(h, params["mlp_l2_w"].astype(f32), precision=hp)
               + params["mlp_l2_b"])

    ncf_in = jnp.concatenate([gmf_out, mlp_out], axis=1)
    return (jnp.dot(ncf_in, params["ncf_linear_w"].astype(f32), precision=hp)
            + params["ncf_linear_b"])[:, 0]


if __name__ == "__main__":
    key = jax.random.PRNGKey(0)
    user_num, item_num, B = 32, 48, 10   # B deliberately not a tile multiple

    kp, ku, ki = jax.random.split(key, 3)
    params = init_params(kp, user_num, item_num)
    user_id = jax.random.randint(ku, (B,), 0, user_num, dtype=jnp.int32)
    item_id = jax.random.randint(ki, (B,), 0, item_num, dtype=jnp.int32)

    prepped = prepare_params(params)
    out = jax.block_until_ready(ncf_forward(user_id, item_id, prepped))
    ref = ncf_reference(user_id, item_id, params)

    assert out.shape == (B,), out.shape
    max_err = jnp.max(jnp.abs(out - ref))
    assert jnp.allclose(out, ref, atol=1e-4, rtol=1e-3), (out, ref, max_err)
    print("KERNEL_OK")
</pallas_src>

<mosaic_0001>
module attributes {stable_mosaic.version = 11 : i64} {
  func.func @ncf_kernel(%arg0: i32, %arg1: memref<16xi32, #tpu.memory_space<smem>>, %arg2: memref<16xi32, #tpu.memory_space<smem>>, %arg3: memref<32x256xf32, #tpu.memory_space<any>>, %arg4: memref<48x256xf32, #tpu.memory_space<any>>, %arg5: memref<256x128xbf16, #tpu.memory_space<vmem>>, %arg6: memref<8x128xf32, #tpu.memory_space<vmem>>, %arg7: memref<8x1xf32, #tpu.memory_space<vmem>>, %arg8: memref<8x256xf32, #tpu.memory_space<vmem>>, %arg9: memref<8x256xf32, #tpu.memory_space<vmem>>, %arg10: memref<2x!tpu.dma_semaphore, #tpu.memory_space<semaphore_mem>>) attributes {dimension_semantics = [#tpu.dimension_semantics<parallel>], iteration_bounds = array<i64: 2>, scalar_prefetch = 2 : i64, scratch_operands = 3 : i64, tpu.core_type = #tpu.core_type<tc>, window_params = [{}, {}, {pipeline_mode = #tpu.pipeline_mode<synchronous>, transform_indices = @transform_2, window_bounds = array<i64: 256, 128>}, {pipeline_mode = #tpu.pipeline_mode<synchronous>, transform_indices = @transform_3, window_bounds = array<i64: 8, 128>}, {transform_indices = @transform_4, window_bounds = array<i64: 8, 1>}]} {
    %c8_i32 = arith.constant 8 : i32
    %0 = arith.muli %arg0, %c8_i32 : i32
    %c0_i32 = arith.constant 0 : i32
    %c8_i32_0 = arith.constant 8 : i32
    %1 = arith.addi %c0_i32, %c8_i32_0 : i32
    %c1_i32 = arith.constant 1 : i32
    scf.for %arg11 = %c0_i32 to %1 step %c1_i32  : i32 {
      %c1_i32_25 = arith.constant 1 : i32
      %30 = arith.muli %arg11, %c1_i32_25 : i32
      %c0_i32_26 = arith.constant 0 : i32
      %31 = arith.addi %c0_i32_26, %30 : i32
      %32 = arith.addi %0, %31 : i32
      %33 = arith.index_cast %32 : i32 to index
      %34 = memref.load %arg1[%33] : memref<16xi32, #tpu.memory_space<smem>>
      %35 = arith.addi %0, %31 : i32
      %36 = arith.index_cast %35 : i32 to index
      %37 = memref.load %arg2[%36] : memref<16xi32, #tpu.memory_space<smem>>
      %c0_i32_27 = arith.constant 0 : i32
      %c0_i32_28 = arith.constant 0 : i32
      %38 = tpu.memref_slice %arg3[%34, %c0_i32_28] : memref<32x256xf32, #tpu.memory_space<any>> -> memref<1x256xf32, #tpu.memory_space<any>>
      %c0_i32_29 = arith.constant 0 : i32
      %39 = tpu.memref_slice %arg8[%31, %c0_i32_29] : memref<8x256xf32, #tpu.memory_space<vmem>> -> memref<1x256xf32, #tpu.memory_space<vmem>>
      %40 = tpu.memref_slice %arg10[%c0_i32_27] : memref<2x!tpu.dma_semaphore, #tpu.memory_space<semaphore_mem>> -> memref<1x!tpu.dma_semaphore, #tpu.memory_space<semaphore_mem>>
      %41 = tpu.memref_squeeze %40 : memref<1x!tpu.dma_semaphore, #tpu.memory_space<semaphore_mem>> -> memref<!tpu.dma_semaphore, #tpu.memory_space<semaphore_mem>>
      tpu.enqueue_dma source(%38 : memref<1x256xf32, #tpu.memory_space<any>>) target(%39 : memref<1x256xf32, #tpu.memory_space<vmem>>) target_semaphore(%41 : memref<!tpu.dma_semaphore, #tpu.memory_space<semaphore_mem>>)
      %c1_i32_30 = arith.constant 1 : i32
      %c0_i32_31 = arith.constant 0 : i32
      %42 = tpu.memref_slice %arg4[%37, %c0_i32_31] : memref<48x256xf32, #tpu.memory_space<any>> -> memref<1x256xf32, #tpu.memory_space<any>>
      %c0_i32_32 = arith.constant 0 : i32
      %43 = tpu.memref_slice %arg9[%31, %c0_i32_32] : memref<8x256xf32, #tpu.memory_space<vmem>> -> memref<1x256xf32, #tpu.memory_space<vmem>>
      %44 = tpu.memref_slice %arg10[%c1_i32_30] : memref<2x!tpu.dma_semaphore, #tpu.memory_space<semaphore_mem>> -> memref<1x!tpu.dma_semaphore, #tpu.memory_space<semaphore_mem>>
      %45 = tpu.memref_squeeze %44 : memref<1x!tpu.dma_semaphore, #tpu.memory_space<semaphore_mem>> -> memref<!tpu.dma_semaphore, #tpu.memory_space<semaphore_mem>>
      tpu.enqueue_dma source(%42 : memref<1x256xf32, #tpu.memory_space<any>>) target(%43 : memref<1x256xf32, #tpu.memory_space<vmem>>) target_semaphore(%45 : memref<!tpu.dma_semaphore, #tpu.memory_space<semaphore_mem>>)
      %c8_i32_33 = arith.constant 8 : i32
      %46 = arith.cmpi sge, %31, %c8_i32_33 : i32
      %47 = arith.extui %46 : i1 to i32
      %c0_i32_34 = arith.constant 0 : i32
      %48 = arith.cmpi ne, %47, %c0_i32_34 : i32
      scf.if %48 {
        %c8_i32_35 = arith.constant 8 : i32
        %49 = arith.subi %31, %c8_i32_35 : i32
        %c0_i32_36 = arith.constant 0 : i32
        %c0_i32_37 = arith.constant 0 : i32
        %c0_i32_38 = arith.constant 0 : i32
        %50 = tpu.memref_slice %arg3[%c0_i32_37, %c0_i32_38] : memref<32x256xf32, #tpu.memory_space<any>> -> memref<1x256xf32, #tpu.memory_space<any>>
        %c0_i32_39 = arith.constant 0 : i32
        %51 = tpu.memref_slice %arg8[%49, %c0_i32_39] : memref<8x256xf32, #tpu.memory_space<vmem>> -> memref<1x256xf32, #tpu.memory_space<vmem>>
        %52 = tpu.memref_slice %arg10[%c0_i32_36] : memref<2x!tpu.dma_semaphore, #tpu.memory_space<semaphore_mem>> -> memref<1x!tpu.dma_semaphore, #tpu.memory_space<semaphore_mem>>
        %53 = tpu.memref_squeeze %52 : memref<1x!tpu.dma_semaphore, #tpu.memory_space<semaphore_mem>> -> memref<!tpu.dma_semaphore, #tpu.memory_space<semaphore_mem>>
        tpu.wait_dma2 semaphore(%53 : memref<!tpu.dma_semaphore, #tpu.memory_space<semaphore_mem>>) src(%50 : memref<1x256xf32, #tpu.memory_space<any>>) dst(%51 : memref<1x256xf32, #tpu.memory_space<vmem>>)
        %c1_i32_40 = arith.constant 1 : i32
        %c0_i32_41 = arith.constant 0 : i32
        %c0_i32_42 = arith.constant 0 : i32
        %54 = tpu.memref_slice %arg4[%c0_i32_41, %c0_i32_42] : memref<48x256xf32, #tpu.memory_space<any>> -> memref<1x256xf32, #tpu.memory_space<any>>
        %c0_i32_43 = arith.constant 0 : i32
        %55 = tpu.memref_slice %arg9[%49, %c0_i32_43] : memref<8x256xf32, #tpu.memory_space<vmem>> -> memref<1x256xf32, #tpu.memory_space<vmem>>
        %56 = tpu.memref_slice %arg10[%c1_i32_40] : memref<2x!tpu.dma_semaphore, #tpu.memory_space<semaphore_mem>> -> memref<1x!tpu.dma_semaphore, #tpu.memory_space<semaphore_mem>>
        %57 = tpu.memref_squeeze %56 : memref<1x!tpu.dma_semaphore, #tpu.memory_space<semaphore_mem>> -> memref<!tpu.dma_semaphore, #tpu.memory_space<semaphore_mem>>
        tpu.wait_dma2 semaphore(%57 : memref<!tpu.dma_semaphore, #tpu.memory_space<semaphore_mem>>) src(%54 : memref<1x256xf32, #tpu.memory_space<any>>) dst(%55 : memref<1x256xf32, #tpu.memory_space<vmem>>)
      } else {
      }
    }
    %c8_i32_1 = arith.constant 8 : i32
    %c0_i32_2 = arith.constant 0 : i32
    %c8_i32_3 = arith.constant 8 : i32
    %2 = arith.addi %c0_i32_2, %c8_i32_3 : i32
    %c1_i32_4 = arith.constant 1 : i32
    scf.for %arg11 = %c0_i32_2 to %2 step %c1_i32_4  : i32 {
      %c1_i32_25 = arith.constant 1 : i32
      %30 = arith.muli %arg11, %c1_i32_25 : i32
      %c0_i32_26 = arith.constant 0 : i32
      %31 = arith.addi %c0_i32_26, %30 : i32
      %c0_i32_27 = arith.constant 0 : i32
      %c0_i32_28 = arith.constant 0 : i32
      %c0_i32_29 = arith.constant 0 : i32
      %32 = tpu.memref_slice %arg3[%c0_i32_28, %c0_i32_29] : memref<32x256xf32, #tpu.memory_space<any>> -> memref<1x256xf32, #tpu.memory_space<any>>
      %c0_i32_30 = arith.constant 0 : i32
      %33 = tpu.memref_slice %arg8[%31, %c0_i32_30] : memref<8x256xf32, #tpu.memory_space<vmem>> -> memref<1x256xf32, #tpu.memory_space<vmem>>
      %34 = tpu.memref_slice %arg10[%c0_i32_27] : memref<2x!tpu.dma_semaphore, #tpu.memory_space<semaphore_mem>> -> memref<1x!tpu.dma_semaphore, #tpu.memory_space<semaphore_mem>>
      %35 = tpu.memref_squeeze %34 : memref<1x!tpu.dma_semaphore, #tpu.memory_space<semaphore_mem>> -> memref<!tpu.dma_semaphore, #tpu.memory_space<semaphore_mem>>
      tpu.wait_dma2 semaphore(%35 : memref<!tpu.dma_semaphore, #tpu.memory_space<semaphore_mem>>) src(%32 : memref<1x256xf32, #tpu.memory_space<any>>) dst(%33 : memref<1x256xf32, #tpu.memory_space<vmem>>)
      %c1_i32_31 = arith.constant 1 : i32
      %c0_i32_32 = arith.constant 0 : i32
      %c0_i32_33 = arith.constant 0 : i32
      %36 = tpu.memref_slice %arg4[%c0_i32_32, %c0_i32_33] : memref<48x256xf32, #tpu.memory_space<any>> -> memref<1x256xf32, #tpu.memory_space<any>>
      %c0_i32_34 = arith.constant 0 : i32
      %37 = tpu.memref_slice %arg9[%31, %c0_i32_34] : memref<8x256xf32, #tpu.memory_space<vmem>> -> memref<1x256xf32, #tpu.memory_space<vmem>>
      %38 = tpu.memref_slice %arg10[%c1_i32_31] : memref<2x!tpu.dma_semaphore, #tpu.memory_space<semaphore_mem>> -> memref<1x!tpu.dma_semaphore, #tpu.memory_space<semaphore_mem>>
      %39 = tpu.memref_squeeze %38 : memref<1x!tpu.dma_semaphore, #tpu.memory_space<semaphore_mem>> -> memref<!tpu.dma_semaphore, #tpu.memory_space<semaphore_mem>>
      tpu.wait_dma2 semaphore(%39 : memref<!tpu.dma_semaphore, #tpu.memory_space<semaphore_mem>>) src(%36 : memref<1x256xf32, #tpu.memory_space<any>>) dst(%37 : memref<1x256xf32, #tpu.memory_space<vmem>>)
    }
    %c8_i32_5 = arith.constant 8 : i32
    %c0 = arith.constant 0 : index
    %c0_6 = arith.constant 0 : index
    %3 = vector.load %arg8[%c0, %c0_6] : memref<8x256xf32, #tpu.memory_space<vmem>>, vector<8x128xf32>
    %c0_7 = arith.constant 0 : index
    %c128 = arith.constant 128 : index
    %4 = vector.load %arg8[%c0_7, %c128] : memref<8x256xf32, #tpu.memory_space<vmem>>, vector<8x128xf32>
    %c0_8 = arith.constant 0 : index
    %c0_9 = arith.constant 0 : index
    %5 = vector.load %arg9[%c0_8, %c0_9] : memref<8x256xf32, #tpu.memory_space<vmem>>, vector<8x128xf32>
    %c0_10 = arith.constant 0 : index
    %c128_11 = arith.constant 128 : index
    %6 = vector.load %arg9[%c0_10, %c128_11] : memref<8x256xf32, #tpu.memory_space<vmem>>, vector<8x128xf32>
    %7 = arith.mulf %3, %5 : vector<8x128xf32>
    %8 = arith.truncf %4 : vector<8x128xf32> to vector<8x128xbf16>
    %c0_12 = arith.constant 0 : index
    %c0_13 = arith.constant 0 : index
    %9 = vector.load %arg5[%c0_12, %c0_13] : memref<256x128xbf16, #tpu.memory_space<vmem>>, vector<128x128xbf16>
    %cst = arith.constant dense<0.000000e+00> : vector<8x128xf32>
    %10 = tpu.matmul %8, %9, %cst {dimension_numbers = #tpu.dot_dimension_numbers<[1], [0], [0], [1], [0, 0, 1, 1], [], []>} : vector<8x128xbf16>, vector<128x128xbf16>, vector<8x128xf32> -> vector<8x128xf32>
    %11 = arith.truncf %6 : vector<8x128xf32> to vector<8x128xbf16>
    %c128_14 = arith.constant 128 : index
    %c0_15 = arith.constant 0 : index
    %12 = vector.load %arg5[%c128_14, %c0_15] : memref<256x128xbf16, #tpu.memory_space<vmem>>, vector<128x128xbf16>
    %cst_16 = arith.constant dense<0.000000e+00> : vector<8x128xf32>
    %13 = tpu.matmul %11, %12, %cst_16 {dimension_numbers = #tpu.dot_dimension_numbers<[1], [0], [0], [1], [0, 0, 1, 1], [], []>} : vector<8x128xbf16>, vector<128x128xbf16>, vector<8x128xf32> -> vector<8x128xf32>
    %14 = arith.addf %10, %13 : vector<8x128xf32>
    %c0_17 = arith.constant 0 : index
    %c0_18 = arith.constant 0 : index
    %15 = vector.load %arg6[%c0_17, %c0_18] : memref<8x128xf32, #tpu.memory_space<vmem>>, vector<1x128xf32>
    %16 = vector.broadcast %15 : vector<1x128xf32> to vector<8x128xf32>
    %17 = arith.addf %14, %16 : vector<8x128xf32>
    %cst_19 = arith.constant 0.000000e+00 : f32
    %18 = vector.broadcast %cst_19 : f32 to vector<8x128xf32>
    %19 = arith.maximumf %17, %18 : vector<8x128xf32>
    %c1 = arith.constant 1 : index
    %c0_20 = arith.constant 0 : index
    %20 = vector.load %arg6[%c1, %c0_20] : memref<8x128xf32, #tpu.memory_space<vmem>>, vector<1x128xf32>
    %21 = vector.broadcast %20 : vector<1x128xf32> to vector<8x128xf32>
    %22 = arith.mulf %7, %21 : vector<8x128xf32>
    %c2 = arith.constant 2 : index
    %c0_21 = arith.constant 0 : index
    %23 = vector.load %arg6[%c2, %c0_21] : memref<8x128xf32, #tpu.memory_space<vmem>>, vector<1x128xf32>
    %24 = vector.broadcast %23 : vector<1x128xf32> to vector<8x128xf32>
    %25 = arith.mulf %19, %24 : vector<8x128xf32>
    %26 = arith.addf %22, %25 : vector<8x128xf32>
    %cst_22 = arith.constant dense<0.000000e+00> : vector<8xf32>
    %27 = vector.multi_reduction <add>, %26, %cst_22 [1] : vector<8x128xf32> to vector<8xf32>
    %28 = vector.shape_cast %27 : vector<8xf32> to vector<8x1xf32>
    %c0_23 = arith.constant 0 : index
    %c0_24 = arith.constant 0 : index
    %29 = vector.load %arg7[%c0_23, %c0_24] : memref<8x1xf32, #tpu.memory_space<vmem>>, vector<8x1xf32>
    tpu.vector_store %arg7[%c0_23, %c0_24], %28 {strides = array<i32>} : memref<8x1xf32, #tpu.memory_space<vmem>>, vector<8x1xf32>,
    return
  }
  func.func @transform_2(%arg0: i32, %arg1: memref<16xi32, #tpu.memory_space<smem>>, %arg2: memref<16xi32, #tpu.memory_space<smem>>) -> (i32, i32) {
    %c0_i32 = arith.constant 0 : i32
    %c0_i32_0 = arith.constant 0 : i32
    %c0_i32_1 = arith.constant 0 : i32
    return %c0_i32, %c0_i32_0 : i32, i32
  }
  func.func @transform_3(%arg0: i32, %arg1: memref<16xi32, #tpu.memory_space<smem>>, %arg2: memref<16xi32, #tpu.memory_space<smem>>) -> (i32, i32) {
    %c0_i32 = arith.constant 0 : i32
    %c0_i32_0 = arith.constant 0 : i32
    %c0_i32_1 = arith.constant 0 : i32
    return %c0_i32, %c0_i32_0 : i32, i32
  }
  func.func @transform_4(%arg0: i32, %arg1: memref<16xi32, #tpu.memory_space<smem>>, %arg2: memref<16xi32, #tpu.memory_space<smem>>) -> (i32, i32) {
    %c0_i32 = arith.constant 0 : i32
    %c0_i32_0 = arith.constant 0 : i32
    return %arg0, %c0_i32 : i32, i32
  }
}

</mosaic_0001>

<bundles_post_ra>
// kernel: ncf_forward.1
= control target key start
LH: loop header
LB: loop body
LE: loop exit
PB: predicated region body
PF: predicated region fallthrough
CT: control target
= control target key end

     0   :  { %s1014_s0 = inlined_call_operand.vmem [shape: s32[16], index: 0, kind: input, shape index: {}]   ;;  %s1015_s2 = inlined_call_operand.hbm [shape: f32[32,256], index: 2, kind: input, shape index: {}]   ;;  %s1016_s3 = inlined_call_operand.hbm [shape: f32[48,256], index: 3, kind: input, shape index: {}]   ;;  %s1017_s4 = inlined_call_operand.hbm [shape: bf16[256,128], index: 4, kind: input, shape index: {}]   ;;  %s1018_s5 = inlined_call_operand.vmem [shape: f32[8,128], index: 5, kind: input, shape index: {}]   ;;  %s1019_s6 = inlined_call_operand.vmem [shape: f32[16,1], index: 6, kind: output, shape index: {}]   ;;  %s1020_s1 = inlined_call_operand.vmem [shape: s32[16], index: 1, kind: input, shape index: {}]  }
   0x1   :  { %s11_s23 = sshll.u32 %s1014_s0, 4  ;;  %s15_s26 = sshll.u32 %s1020_s1, 4  ;;  %s12_s23 = int_to_ptr.vmem [resolvable:$true] %s11_s23  ;;  %s16_s26 = int_to_ptr.vmem [resolvable:$true] %s15_s26 }
   0x2   :  { %s699_s27 = scalar_lea.vmem %s12_s23, 16  ;;  %p704_p1 = scmp.lt.s32.totalorder %s12_s23, %s12_s23 }
   0x3   :  { %p700_p0 = scmp.ne.s32.totalorder %s12_s23, %s699_s27  ;;  %p705_p2 = scmp.lt.s32.totalorder %s699_s27, %s699_s27 }
   0x5   :  { %p706_p3 = por %p705_p2, %p704_p1 }
   0x7   :  { %p707_p4 = pnand %p706_p3, %p700_p0 }
   0x9   :  { %710 = shalt.err (!%p707_p4)  }
   0xa   :  { %s841_s28 = smov [#allocation6]   ;;  %s711_s29 = scalar_lea.vmem %s16_s26, 16 }
   0xb   :  { %14 = dma.vmem_to_smem %s12_s23, 16, %s841_s28, [#allocation5] }
   0xc   :  { %p712_p5 = scmp.ne.s32.totalorder %s16_s26, %s711_s29  ;;  %p716_p6 = scmp.lt.s32.totalorder %s16_s26, %s16_s26 }
   0xd   :  { %p717_p7 = scmp.lt.s32.totalorder %s711_s29, %s711_s29 }
   0xf   :  { %p718_p8 = por %p717_p7, %p716_p6 }
  0x11   :  { %p719_p9 = pnand %p718_p8, %p712_p5 }
  0x13   :  { %722 = shalt.err (!%p719_p9)  }
  0x14   :  { %s842_s0 = smov [#allocation7]  }
  0x15   :  { %18 = dma.vmem_to_smem %s16_s26, 16, %s842_s0, [#allocation5] }
  0x16   :  { %811 = dma.done.wait [#allocation5], 32 }
  0x17   :  { %812 = vsyncadd [#allocation5], 4294967264 }
  0x18   :  { %20 = sfence }
  0x19   :  { %21 = vsyncpa [#allocation9], 0  ;;  %s893_s1 = smov 0  }
  0x1a LB: > { %s899_s30 = sadd.s32 4294967295, %s831_s1   ;;  %p543_p10 = scmp.ge.s32.totalorder %s831_s1, 1  ;;  %s831_s1 = sphi %s893_s1, %s27_s1  }
  0x1b   : > { %p100_p11 = scmp.lt.s32.totalorder %s831_s1, 3  ;;  %s843_s7 = smov [#allocation8]  }
  0x1c   : > { %s112_s8 = sshll.u32 %s843_s7, 4  ;;  %p1021_p13 = scmp.eq.s32.totalorder %s899_s30, 0  ;;  %s113_s8 = int_to_ptr.vmem [resolvable:$true] %s112_s8 }
  0x1d   : > { %p903_p12 = pnand %p543_p10, %p100_p11  ;;  %s723_s13 = scalar_lea.hbm %s1017_s4, 2048 }
  0x1e   : > { %p724_p2 = scmp.ne.s32.totalorder %s1017_s4, %s723_s13  ;;  %p730_p6 = scmp.lt.u32.totalorder %s723_s13, %s1017_s4 }
  0x1f   : > { %s1023_s9 = scalar_select %p903_p12, 1, 0 }
  0x20   : > { %p643_p0 = pneg %p903_p12 }
  0x22   : > { %p912_p1 = pnand %p1021_p13, %p643_p0 }
  0x24   : > { %p725_p3 = pneg %p912_p1 }
  0x26   : > { %p726_p4 = pnand %p725_p3, %p724_p2 }
  0x28   : > { %p727_p5 = pneg %p726_p4 }
  0x2a   : > { %p732_p7 = pnand %p730_p6, %p727_p5 }
  0x2c   : > { %735 = shalt.err (!%p732_p7)
}
  0x2d   : > { %s736_s18 = scalar_lea.vmem %s113_s8, 2048  ;;  %p744_p11 = scmp.lt.s32.totalorder %s113_s8, %s113_s8 }
  0x2e   : > { %p737_p8 = scmp.ne.s32.totalorder %s113_s8, %s736_s18  ;;  %p745_p0 = scmp.lt.s32.totalorder %s736_s18, %s736_s18 }
  0x30   : > { %p739_p9 = pnand %p737_p8, %p725_p3  ;;  %p746_p13 = por %p745_p0, %p744_p11 }
  0x32   : > { %p740_p10 = pneg %p739_p9 }
  0x34   : > { %p747_p12 = pnand %p746_p13, %p740_p10 }
  0x36   : > { %750 = shalt.err (!%p747_p12)
}
  0x37   : > { %s844_s19 = smov 64   ;;  %s845_s20 = smov 4  }
  0x38   : > { %646 = dma.hbm_to_vmem [thread:$0]  (!%p912_p1), %s1017_s4, 2048, %s113_s8, [#allocation9], %s844_s19, %s844_s19, %s845_s20  }
  0x39   : > { %p1025_p2 = scmp.ne.s32.totalorder %s1023_s9, 0 }
  0x3a   : > { %p1026_p4 = scmp.eq.s32.totalorder (!%p1025_p2), %s899_s30, 0 }
  0x3b   : > { %131 = sbr.rel (%p1025_p2) target bundleno = 548 (0x224), region = 28 }
  0x42   : > { %814 = dma.done.wait (%p1026_p4), [#allocation9], 2048   ;;  %p1027_p3 = pmov %p1026_p4 }
  0x43   : > { %p147_p12 = scmp.lt.s32.totalorder %s899_s30, 1  ;;  %s946_s29 = smov 0  }
  0x44   : > { %816 = vsyncadd (%p1027_p3), [#allocation9], 4294965248 }
  0x45   : > { %s148_s24 = scalar_select %p147_p12, %s899_s30, 1 }
  0x47   : > { %s547_s25 = sshll.u32 %s148_s24, 3 }
  0x48   : > { %s944_s28 = scalar_lea.vmem %s1019_s6, %s547_s25 }
  0x49 LB: >> { %s1028_s23 = sshll.u32 %s899_s30, 3  ;;  %s168_s7 = sshrl.u32 %s835_s29, 3  ;;  %s835_s29 = sphi %s946_s29, %s158_s29  }
  0x4a   : >> { %s159_s0 = sadd.s32 %s835_s29, %s1028_s23  ;;  %s169_s10 = sand.u32 7, %s835_s29  }
  0x4b   : >> { %s160_s8 = sld [smem:[#allocation6 + %s159_s0]]  ;;  %s551_s11 = sshll.u32 %s168_s7, 4 }
  0x4c   : >> { %s161_s9 = sld [smem:[#allocation7 + %s159_s0]]  ;;  %s171_s12 = sadd.s32 %s551_s11, %s169_s10 }
  0x4d   : >> { %s172_s13 = scalar_lea.vmem [#allocation2], %s171_s12  ;;  %p649_p13 = scmp.ge.s32.totalorder %s835_s29, 8 }
  0x4e   : >> { %s174_s14 = sshll.u32 %s172_s13, 4  ;;  %s184_s15 = scalar_lea.vmem [#allocation3], %s171_s12  ;;  %s957_s14 = int_to_ptr.vmem [resolvable:$true] %s174_s14 }
  0x4f   : >> { %s959_s16 = sshll.u32 %s184_s15, 4  ;;  %s753_s12 = scalar_lea.hbm %s1015_s2, 1024  ;;  %s188_s16 = int_to_ptr.vmem [resolvable:$true] %s959_s16 }
  0x51   : >> { %s162_s17 = sshrl.u32 %s160_s8, 3  ;;  %s163_s18 = sand.u32 7, %s160_s8  }
  0x52   : >> { %s549_s19 = sshll.u32 %s162_s17, 4  ;;  %s178_s20 = sshrl.u32 %s161_s9, 3 }
  0x53   : >> { %s165_s21 = sadd.s32 %s549_s19, %s163_s18  ;;  %s179_s22 = sand.u32 7, %s161_s9  }
  0x54   : >> { %s550_s24 = sshll.u32 %s165_s21, 4  ;;  %s552_s25 = sshll.u32 %s178_s20, 4 }
  0x55   : >> { %s167_s0 = scalar_lea.hbm %s1015_s2, %s550_s24  ;;  %s181_s7 = sadd.s32 %s552_s25, %s179_s22 }
  0x56   : >> { %s751_s10 = scalar_lea.hbm %s167_s0, 32  ;;  %p754_p5 = scmp.lt.u32.totalorder %s167_s0, %s1015_s2 }
  0x57   : >> { %p752_p1 = scmp.ne.s32.totalorder %s167_s0, %s751_s10  ;;  %p755_p6 = scmp.lt.u32.totalorder %s753_s12, %s751_s10 }
  0x58   : >> { %p757_p8 = scmp.lt.u32.totalorder %s751_s10, %s167_s0 }
  0x59   : >> { %p756_p7 = por %p755_p6, %p754_p5 }
  0x5b   : >> { %p758_p9 = por %p757_p8, %p756_p7 }
  0x5d   : >> { %p759_p10 = pnand %p758_p9, %p752_p1 }
  0x5f   : >> { %762 = shalt.err (!%p759_p10)  }
  0x60   : >> { %s763_s8 = scalar_lea.vmem %s957_s14, 32  ;;  %s846_s9 = smov [#allocation2]  }
  0x61   : >> { %p764_p11 = scmp.ne.s32.totalorder %s957_s14, %s763_s8  ;;  %s765_s17 = sshll.u32 %s846_s9, 4  ;;  %s766_s17 = int_to_ptr.vmem [resolvable:$false] %s765_s17 }
  0x62   : >> { %s767_s18 = scalar_lea.vmem %s766_s17, 256  ;;  %p768_p0 = scmp.lt.s32.totalorder %s957_s14, %s766_s17 }
  0x63   : >> { %p769_p2 = scmp.lt.s32.totalorder %s767_s18, %s763_s8 }
  0x65   : >> { %p770_p4 = por %p769_p2, %p768_p0 }
  0x67   : >> { %p771_p3 = pnand %p770_p4, %p764_p11 }
  0x69   : >> { %774 = shalt.err (!%p771_p3)  }
  0x6a   : >> { %s847_s23 = smov 128   ;;  %s848_s19 = smov 1  }
  0x6b   : >> { %177 = dma.hbm_to_vmem [thread:$0]  %s167_s0, 32, %s957_s14, [#allocation4], %s847_s23, %s847_s23, %s848_s19 }
  0x6c   : >> { %s553_s20 = sshll.u32 %s181_s7, 4  ;;  %s777_s10 = scalar_lea.hbm %s1016_s3, 1536 }
  0x6d   : >> { %s183_s24 = scalar_lea.hbm %s1016_s3, %s553_s20 }
  0x6e   : >> { %s775_s25 = scalar_lea.hbm %s183_s24, 32  ;;  %p778_p1 = scmp.lt.u32.totalorder %s183_s24, %s1016_s3 }
  0x6f   : >> { %p776_p12 = scmp.ne.s32.totalorder %s183_s24, %s775_s25  ;;  %p779_p5 = scmp.lt.u32.totalorder %s777_s10, %s775_s25 }
  0x70   : >> { %p781_p7 = scmp.lt.u32.totalorder %s775_s25, %s183_s24 }
  0x71   : >> { %p780_p6 = por %p779_p5, %p778_p1 }
  0x73   : >> { %p782_p8 = por %p781_p7, %p780_p6 }
  0x75   : >> { %p783_p9 = pnand %p782_p8, %p776_p12 }
  0x77   : >> { %786 = shalt.err (!%p783_p9)  }
  0x78   : >> { %s787_s14 = scalar_lea.vmem %s188_s16, 32  ;;  %s849_s0 = smov [#allocation3]  }
  0x79   : >> { %p788_p10 = scmp.ne.s32.totalorder %s188_s16, %s787_s14  ;;  %s789_s7 = sshll.u32 %s849_s0, 4  ;;  %s790_s7 = int_to_ptr.vmem [resolvable:$false] %s789_s7 }
  0x7a   : >> { %s791_s12 = scalar_lea.vmem %s790_s7, 256  ;;  %p792_p11 = scmp.lt.s32.totalorder %s188_s16, %s790_s7 }
  0x7b   : >> { %p793_p0 = scmp.lt.s32.totalorder %s791_s12, %s787_s14 }
  0x7d   : >> { %p794_p2 = por %p793_p0, %p792_p11 }
  0x7f   : >> { %p795_p4 = pnand %p794_p2, %p788_p10 }
  0x81   : >> { %798 = shalt.err (!%p795_p4)  }
  0x82   : >> { %190 = dma.hbm_to_vmem [thread:$0]  %s183_s24, 32, %s188_s16, [#allocation4 + $0x1], %s847_s23, %s847_s23, %s848_s19 }
  0x83   : >> { %818 = dma.done.wait (%p649_p13), [#allocation4], 32 }
  0x84   : >> { %820 = vsyncadd (%p649_p13), [#allocation4], 4294967264 }
  0x85   : >> { %822 = dma.done.wait (%p649_p13), [#allocation4 + $0x1], 32 }
  0x86   : >> { %824 = vsyncadd (%p649_p13), [#allocation4 + $0x1], 4294967264  ;;  %s158_s29 = sadd.s32 1, %s835_s29  }
  0x87   : >> { %p155_p3 = scmp.ge.s32.totalorder %s158_s29, 8  }
  0x88   : > { %s837_s15 = smov (%p155_p3), 0  }
  0x89   : > { %157 = sbr.rel (!%p155_p3) target bundleno = 73 (0x49), region = 85 }
  0x90 LB: >> { %825 = dma.done.wait [#allocation4], 32  ;;  %s839_s15 = sphi %s837_s15, %s205_s15  }
  0x91   : >> { %826 = vsyncadd [#allocation4], 4294967264 }
  0x92   : >> { %827 = dma.done.wait [#allocation4 + $0x1], 32 }
  0x93   : >> { %828 = vsyncadd [#allocation4 + $0x1], 4294967264  ;;  %s205_s15 = sadd.s32 1, %s839_s15  }
  0x94   : >> { %p202_p12 = scmp.ge.s32.totalorder %s205_s15, 8  }
  0x95   : > { %v683_v0 = vld [vmem:[#allocation8 + $0x40] sm:$0xff] (%p202_p12)   ;;  %v850_v1 = vmov (%p202_p12), 0.0   ;;  %v685_v3 = vld [vmem:[#allocation8 + $0x48] sm:$0xff] (%p202_p12)   ;;  %vm851_vm0 = vmmov (%p202_p12), 0   ;;  %v687_v5 = vld [vmem:[#allocation8 + $0x50] sm:$0xff] (%p202_p12)   ;;  %vm449_vm1 = vcmask (%p202_p12), 7168  }
  0x96   : > { %204 = sbr.rel (!%p202_p12) target bundleno = 144 (0x90), region = 96  ;;  %596 = vmatprep.subr.bf16.mxu0 (%p202_p12), %v850_v1  ;;  %616 = vmatprep.subr.bf16.mxu1 (%p202_p12), %v850_v1  ;;  %v684_v2 = vld [vmem:[#allocation8] sm:$0xff] (%p202_p12)   ;;  %v686_v4 = vld [vmem:[#allocation8 + $0x8] sm:$0xff] (%p202_p12)   ;;  %v688_v6 = vld [vmem:[#allocation8 + $0x10] sm:$0xff] (%p202_p12)  }
  0x97   : > { %597 = vmatpush3.bf16.msra.mxu0 (%p202_p12), %v683_v0  ;;  %612 = vmatprep.mubr.msk.bf16.mxu0 (%p202_p12), %vm851_vm0, %v850_v1  ;;  %v689_v7 = vld [vmem:[#allocation8 + $0x58] sm:$0xff] (%p202_p12)   ;;  %v691_v9 = vld [vmem:[#allocation8 + $0x60] sm:$0xff] (%p202_p12)   ;;  %v693_v11 = vld [vmem:[#allocation8 + $0x68] sm:$0xff] (%p202_p12)  }
  0x98   : > { %617 = vmatpush3.bf16.msra.mxu1 (%p202_p12), %v684_v2  ;;  %598 = vmatprep.subr.bf16.mxu0 (%p202_p12), %v850_v1  ;;  %v690_v8 = vld [vmem:[#allocation8 + $0x18] sm:$0xff] (%p202_p12)   ;;  %v692_v10 = vld [vmem:[#allocation8 + $0x20] sm:$0xff] (%p202_p12)   ;;  %v694_v12 = vld [vmem:[#allocation8 + $0x28] sm:$0xff] (%p202_p12)  }
  0x99   : > { %618 = vmatprep.subr.bf16.mxu1 (%p202_p12), %v850_v1  ;;  %632 = vmatprep.mubr.msk.bf16.mxu1 (%p202_p12), %vm851_vm0, %v850_v1  ;;  %v695_v13 = vld [vmem:[#allocation8 + $0x70] sm:$0xff] (%p202_p12)   ;;  %v697_v15 = vld [vmem:[#allocation8 + $0x78] sm:$0xff] (%p202_p12)   ;;  %v213_v18 = vld [vmem:[#allocation2 + $0x8] sm:$0xff] (%p202_p12) }
  0x9a   : > { %v696_v14 = vld [vmem:[#allocation8 + $0x30] sm:$0xff] (%p202_p12)   ;;  %v215_v16 = vld [vmem:[#allocation3 + $0x8] sm:$0xff] (%p202_p12)  ;;  %v217_v20 = vpack.c.bf16 (%p202_p12), %v213_v18, %v213_v18  ;;  %v212_v21 = vld [vmem:[#allocation2] sm:$0xff] (%p202_p12) }
  0x9b   : > { %599 = vmatpush3.bf16.msra.mxu0 (%p202_p12), %v685_v3  ;;  %v698_v17 = vld [vmem:[#allocation8 + $0x38] sm:$0xff] (%p202_p12)   ;;  %v234_v19 = vpack.c.bf16 (%p202_p12), %v215_v16, %v215_v16  ;;  %v214_v22 = vld [vmem:[#allocation3] sm:$0xff] (%p202_p12)  ;;  %v571_v25 = vld [vmem:[%s1018_s5] ss:$0 sm:$0xff] (%p202_p12) }
  0x9c   : > { %619 = vmatpush3.bf16.msra.mxu1 (%p202_p12), %v686_v4  ;;  %600 = vmatprep.subr.bf16.mxu0 (%p202_p12), %v850_v1  ;;  %v216_v30 = vmul.f32 (%p202_p12), %v214_v22, %v212_v21  ;;  %v572_v33 = vld [vmem:[%s1018_s5 + $0x1] ss:$0 sm:$0xff] (%p202_p12)  ;;  %v573_v36 = vld [vmem:[%s1018_s5 + $0x2] ss:$0 sm:$0xff] (%p202_p12) }
  0x9d   : > { %620 = vmatprep.subr.bf16.mxu1 %v850_v1 }
  0x9e   : > { %v439_v38 = vmul.f32 %v572_v33, %v216_v30 }
  0x9f   : > { %601 = vmatpush3.bf16.msra.mxu0 %v687_v5 }
  0xa0   : > { %621 = vmatpush3.bf16.msra.mxu1 %v688_v6  ;;  %602 = vmatprep.subr.bf16.mxu0 %v850_v1 }
  0xa1   : > { %622 = vmatprep.subr.bf16.mxu1 %v850_v1 }
  0xa3   : > { %603 = vmatpush3.bf16.msra.mxu0 %v689_v7 }
  0xa4   : > { %623 = vmatpush3.bf16.msra.mxu1 %v690_v8  ;;  %604 = vmatprep.subr.bf16.mxu0 %v850_v1 }
  0xa5   : > { %624 = vmatprep.subr.bf16.mxu1 %v850_v1 }
  0xa7   : > { %605 = vmatpush3.bf16.msra.mxu0 %v691_v9 }
  0xa8   : > { %625 = vmatpush3.bf16.msra.mxu1 %v692_v10  ;;  %606 = vmatprep.subr.bf16.mxu0 %v850_v1 }
  0xa9   : > { %626 = vmatprep.subr.bf16.mxu1 %v850_v1 }
  0xab   : > { %607 = vmatpush3.bf16.msra.mxu0 %v693_v11 }
  0xac   : > { %627 = vmatpush3.bf16.msra.mxu1 %v694_v12  ;;  %608 = vmatprep.subr.bf16.mxu0 %v850_v1 }
  0xad   : > { %628 = vmatprep.subr.bf16.mxu1 %v850_v1 }
  0xaf   : > { %609 = vmatpush3.bf16.msra.mxu0 %v695_v13 }
  0xb0   : > { %629 = vmatpush3.bf16.msra.mxu1 %v696_v14  ;;  %610 = vmatprep.subr.bf16.mxu0 %v850_v1 }
  0xb1   : > { %630 = vmatprep.subr.bf16.mxu1 %v850_v1 }
  0xb3   : > { %611 = vmatpush3.bf16.msra.mxu0 %v697_v15 }
  0xb4   : > { %631 = vmatpush3.bf16.msra.mxu1 %v698_v17 }
  0xb6   : > { %613 = vmatmul.mubr.bf16.vlgmr.msra.gmra.mrb[0].mxu0 %v234_v19 }
  0xb7   : > { %633 = vmatmul.mubr.bf16.vlgmr.msra.gmra.mrb[0].mxu1 %v217_v20 }
 0x189   : > { %v333_v23 = vpop.f32.mrb[0].mxu0 }
 0x18a   : > { %v421_v24 = vpop.f32.mrb[0].mxu1  ;;  %v614_v26 = vpop.f32.mrb[1].mxu0 }
 0x18b   : > { %v422_v27 = vadd.f32 %v421_v24, %v333_v23  ;;  %v634_v28 = vpop.f32.mrb[1].mxu1  ;;  %v336_v29 = vpop.f32.mrb[2].mxu0 }
 0x18c   : > { %v424_v31 = vpop.f32.mrb[2].mxu1  ;;  %v615_v32 = vpop.f32.mrb[3].mxu0 }
 0x18d   : > { %v432_v34 = vadd.f32 %v571_v25, %v422_v27  ;;  %v635_v35 = vpop.f32.mrb[3].mxu1 }
 0x18f   : > { %v433_v37 = vmax.f32 %v432_v34, 0.0 }
 0x191   : > { %v445_v39 = vmul.f32 %v573_v36, %v433_v37 }
 0x193   : > { %v446_v40 = vadd.f32 %v445_v39, %v439_v38 }
 0x195   : > { %447 = vadd.xlane.f32.xlu0 %v446_v40 }
 0x222   : > { %v448_v41 = vpop.xlane.xlu0 %447 }
 0x223   : > { %450 = vst.msk [vmem:[%s944_s28] sm:$0xff] %vm449_vm1, %v448_v41 }
 0x224 PF: > { %s27_s1 = sadd.s32 1, %s831_s1  }
 0x225   : > { %p24_p13 = scmp.ge.s32.totalorder %s27_s1, 4  }
 0x227   :  { %26 = sbr.rel (!%p24_p13) target bundleno = 26 (0x1a), region = 107 }
 0x22e   :  { %470 = vsyncpa [#allocation9], 1 }
 0x22f   :  { %472 = vsyncpa [#allocation9 + $0x1], 1 }
 0x230   :  { %473 = vsyncmov [#allocation4] }
 0x233   :  { %s474_s18 = vpop.sfrf %473 }
 0x234   :  { %p576_p1 = scmp.ne.s32.totalorder %s474_s18, 0 }
 0x236   :  { %478 = shalt.err (%p576_p1)  }
 0x237   :  { %480 = vsyncmov [#allocation4 + $0x1] }
 0x23a   :  { %s481_s23 = vpop.sfrf %480 }
 0x23b   :  { %p577_p5 = scmp.ne.s32.totalorder %s481_s23, 0 }
 0x23d   :  { %485 = shalt.err (%p577_p5)  }

</bundles_post_ra>
